<compile_context>
chip_gen: v7x
topology: tpu7x:2x2x1
jax: 0.10.0
libtpu: 0.0.40
codegen_flags: <defaults>
</compile_context>

<pallas_src>
import functools

import jax
import jax.numpy as jnp
from jax.experimental import pallas as pl
from jax.experimental.pallas import tpu as pltpu

NEGATIVE_SLOPE = 1.0


def _rowsum_leaky_kernel(x_ref, o_ref, *, negative_slope):
    # x_ref: (1, tm, K) block in VMEM;  o_ref: (1, tm, M) block.
    x = x_ref[...].astype(jnp.float32)
    # x @ ones.T == row-sum of x broadcast along the output (lane) dimension.
    s = jnp.sum(x, axis=-1, keepdims=True)                 # (1, tm, 1), f32
    if negative_slope != 1.0:
        # Apply the leaky select on the row-sum (pre-broadcast): M-fold less VPU work.
        s = jnp.where(s > 0, s, negative_slope * s)
    s = s.astype(o_ref.dtype)                               # narrow dtype before broadcast
    o_ref[...] = jnp.broadcast_to(s, o_ref.shape)


def _choose_row_tile(M, K, budget_bytes=16 * 1024 * 1024):
    """Largest row tile that divides M, is a multiple of 8, and keeps the
    double-buffered (input + output) f32 blocks under `budget_bytes`
    (conservative for v7x's 64 MiB VMEM / 32 MiB scoped default)."""
    if M % 8 != 0:
        return M  # must use the full (non-8-divisible) dim as the block
    best = 8
    for tm in range(8, M + 1, 8):
        if M % tm:
            continue
        blk_bytes = 2 * tm * (K + M) * 4  # 2 buffers each for in (tm,K) + out (tm,M)
        if blk_bytes <= budget_bytes:
            best = tm
    return best


def model_forward(x1, negative_slope=NEGATIVE_SLOPE):
    B, M, K = x1.shape
    # TODO(synk): bias=torch.zeros_like(x1) has shape (B, M, K), which cannot broadcast
    # onto the (B, M, M) linear output; since it is identically zero it is omitted.
    tm = _choose_row_tile(M, K)
    grid = (B, M // tm)
    kernel = functools.partial(_rowsum_leaky_kernel, negative_slope=negative_slope)
    return pl.pallas_call(
        kernel,
        out_shape=jax.ShapeDtypeStruct((B, M, M), x1.dtype),
        grid_spec=pltpu.PrefetchScalarGridSpec(
            num_scalar_prefetch=0,
            grid=grid,
            in_specs=[pl.BlockSpec((1, tm, K), lambda b, i: (b, i, 0))],
            out_specs=pl.BlockSpec((1, tm, M), lambda b, i: (b, i, 0)),
        ),
        compiler_params=pltpu.CompilerParams(
            dimension_semantics=("parallel", "parallel"),
        ),
    )(x1)


if __name__ == "__main__":
    key = jax.random.PRNGKey(0)
    x1 = jax.random.normal(key, (2, 3, 4), dtype=jnp.float32)

    out = model_forward(x1, NEGATIVE_SLOPE)
    out = jax.block_until_ready(out)

    # Pure-JAX reference: v1[b] = x1[b] @ ones.T, then leaky select.
    v1_ref = jnp.einsum("bmk,bnk->bmn", x1, jnp.ones_like(x1))
    ref = jnp.where(v1_ref > 0, v1_ref, NEGATIVE_SLOPE * v1_ref)
    assert out.shape == (2, 3, 3), out.shape
    assert jnp.allclose(out, ref, atol=1e-5, rtol=1e-5)

    print("KERNEL_OK")
</pallas_src>

<mosaic_0001>
module attributes {stable_mosaic.version = 11 : i64} {
  func.func @_rowsum_leaky_kernel(%arg0: i32, %arg1: i32, %arg2: memref<1x3x4xf32, #tpu.memory_space<vmem>>, %arg3: memref<1x3x3xf32, #tpu.memory_space<vmem>>) attributes {dimension_semantics = [#tpu.dimension_semantics<parallel>, #tpu.dimension_semantics<parallel>], iteration_bounds = array<i64: 2, 1>, scalar_prefetch = 0 : i64, scratch_operands = 0 : i64, tpu.core_type = #tpu.core_type<tc>, window_params = [{transform_indices = @transform_0, window_bounds = array<i64: 1, 3, 4>}, {transform_indices = @transform_1, window_bounds = array<i64: 1, 3, 3>}]} {
    %c0 = arith.constant 0 : index
    %c0_0 = arith.constant 0 : index
    %c0_1 = arith.constant 0 : index
    %0 = vector.load %arg2[%c0, %c0_0, %c0_1] : memref<1x3x4xf32, #tpu.memory_space<vmem>>, vector<1x3x4xf32>
    %cst = arith.constant dense<0.000000e+00> : vector<1x3xf32>
    %1 = vector.multi_reduction <add>, %0, %cst [2] : vector<1x3x4xf32> to vector<1x3xf32>
    %2 = vector.shape_cast %1 : vector<1x3xf32> to vector<1x3x1xf32>
    %3 = vector.shape_cast %2 : vector<1x3x1xf32> to vector<1x3x1xf32>
    %4 = vector.broadcast %3 : vector<1x3x1xf32> to vector<1x3x3xf32>
    %c0_2 = arith.constant 0 : index
    %c0_3 = arith.constant 0 : index
    %c0_4 = arith.constant 0 : index
    %5 = vector.load %arg3[%c0_2, %c0_3, %c0_4] : memref<1x3x3xf32, #tpu.memory_space<vmem>>, vector<1x3x3xf32>
    tpu.vector_store %arg3[%c0_2, %c0_3, %c0_4], %4 {strides = array<i32>} : memref<1x3x3xf32, #tpu.memory_space<vmem>>, vector<1x3x3xf32>,
    return
  }
  func.func @transform_0(%arg0: i32, %arg1: i32) -> (i32, i32, i32) {
    %c0_i32 = arith.constant 0 : i32
    %c0_i32_0 = arith.constant 0 : i32
    return %arg0, %arg1, %c0_i32 : i32, i32, i32
  }
  func.func @transform_1(%arg0: i32, %arg1: i32) -> (i32, i32, i32) {
    %c0_i32 = arith.constant 0 : i32
    %c0_i32_0 = arith.constant 0 : i32
    return %arg0, %arg1, %c0_i32 : i32, i32, i32
  }
}

</mosaic_0001>

<bundles_post_ra>
// kernel: tpu_custom_call.1
= control target key start
LH: loop header
LB: loop body
LE: loop exit
PB: predicated region body
PF: predicated region fallthrough
CT: control target
= control target key end

     0   :  { %s291_s6 = smov 0   ;;  %s293_s7 = smov 0   ;;  %s312_s0 = inlined_call_operand.vmem [shape: f32[2,3,4], index: 0, kind: input, shape index: {}]   ;;  %s313_s1 = inlined_call_operand.vmem [shape: f32[2,3,3], index: 1, kind: output, shape index: {}]  }
   0x1   :  { %s295_s8 = smov 0  }
   0x2 LB: > { %s23_s9 = sadd.s32 1, %s275_s7  ;;  %p228_p0 = scmp.ge.s32.totalorder %s279_s8, 1  ;;  %s279_s8 = sphi %s295_s8, %s11_s8   ;;  %s275_s7 = sphi %s293_s7, %s315_s7   ;;  %s271_s6 = sphi %s291_s6, %s314_s6  }
   0x3   : > { %p25_p1 = scmp.ge.s32.totalorder %s23_s9, 2  ;;  %p105_p2 = scmp.lt.s32.totalorder %s279_s8, 3 }
   0x5   : > { %s317_s9 = smov (%p25_p1, %s23_s9), 0  ;;  %p106_p3 = pnand %p228_p0, %p105_p2 }
   0x6   : > { %p129_p4 = scmp.lt.s32.totalorder (!%p106_p3), %s271_s6, 1  ;;  %vm144_vm0 = vcmask (!%p106_p3), 26624   ;;  %vm148_vm1 = vcmask (!%p106_p3), 18432  }
   0x7   : > { %109 = sbr.rel (%p106_p3) target bundleno = 162 (0xa2), region = 24 }
   0xe   : > { %s319_s6 = smov (!%p129_p4, %s271_s6), 1 }
   0xf   : > { %s229_s10 = sshll.u32 %s319_s6, 2 }
  0x10   : > { %s135_s13 = scalar_lea.vmem %s312_s0, %s229_s10  ;;  %s142_s16 = scalar_lea.vmem %s313_s1, %s229_s10 }
  0x11   : > { %v143_v0 = vld [vmem:[%s135_s13] sm:$0x7] }
  0x12   : > { %v145_v1 = vsel %vm144_vm0, %v143_v0, 0.0 }
  0x13   : > { %146 = vadd.xlane.f32.xlu0 %v145_v1 }
  0xa0   : > { %v147_v2 = vpop.xlane.xlu0 %146 }
  0xa1   : > { %149 = vst.msk [vmem:[%s142_s16] sm:$0x7] %vm148_vm1, %v147_v2 }
  0xa2 PF: > { %s11_s8 = sadd.s32 1, %s279_s8   ;;  %s314_s6 = smov %s275_s7 }
  0xa3   : > { %p8_p5 = scmp.ge.s32.totalorder %s11_s8, 4   ;;  %s315_s7 = smov %s317_s9 }
  0xa5   :  { %10 = sbr.rel (!%p8_p5) target bundleno = 2 (0x2), region = 54 }

</bundles_post_ra>
